<compile_context>
chip_gen: v7x
topology: tpu7x:2x2x1
jax: 0.10.0
libtpu: 0.0.40
codegen_flags: <defaults>
</compile_context>

<pallas_src>
import functools

import jax
import jax.numpy as jnp
from jax import lax
from jax.experimental import pallas as pl
from jax.experimental.pallas import tpu as pltpu


def _round_up(x, m):
    return ((x + m - 1) // m) * m


def prepare_classifier_params(emb_table, w1, b1, w2, b2, max_len,
                              param_dtype=jnp.float32):
    """One-time (init-side) fusion + padding of the module parameters.

    emb_table : [V, D]   embedding weight
    w1        : [D, H]   first Linear weight in [in, out] layout
    b1        : [H]      first Linear bias
    w2        : [H, C]   second Linear weight in [in, out] layout
    b2        : [C]      second Linear bias
    max_len   : L        fixed sequence length used by the mean pool

    Returns (w1_aug, w2_aug, meta):
      w1_aug : [V_pad, H_pad]  rows 0..V-1 = (emb @ w1)/L,  row V = [b1 | 1.0 | 0...]
      w2_aug : [H_pad, C_pad]  rows 0..H-1 = w2,            row H = b2
    """
    V, D = emb_table.shape
    H = w1.shape[-1]
    C = w2.shape[-1]

    V_pad = _round_up(max(V + 1, 128), 128)   # +1 row for the folded b1 / ones column
    H_pad = _round_up(max(H + 1, 128), 128)   # +1 column feeds the folded b2
    C_pad = _round_up(max(C, 128), 128)       # lane-dense output

    # mean-pool then Linear is linear  =>  fold (emb_table @ w1) * (1/L) into one matrix.
    fused = (emb_table.astype(jnp.float32) @ w1.astype(jnp.float32)) / float(max_len)

    w1_aug = jnp.zeros((V_pad, H_pad), jnp.float32)
    w1_aug = w1_aug.at[:V, :H].set(fused)
    w1_aug = w1_aug.at[V, :H].set(jnp.reshape(b1, (-1,)).astype(jnp.float32))  # bias row
    w1_aug = w1_aug.at[V, H].set(1.0)   # the "ones" column that carries b2 through layer 2

    w2_aug = jnp.zeros((H_pad, C_pad), jnp.float32)
    w2_aug = w2_aug.at[:H, :C].set(w2.astype(jnp.float32))
    w2_aug = w2_aug.at[H, :C].set(jnp.reshape(b2, (-1,)).astype(jnp.float32))  # bias row

    meta = dict(vocab=V, hidden=H, num_classes=C, bias_row=V)
    return w1_aug.astype(param_dtype), w2_aug.astype(param_dtype), meta


def classifier_kernel(ids_ref, w1_ref, w2_ref, out_ref, *, bias_row):
    """token counts -> counts_aug @ W1_aug -> ReLU -> @ W2_aug -> logits.

    ids_ref : VMEM [B, L]          int32 token ids (< bias_row)
    w1_ref  : VMEM [V_pad, H_pad]  fused (emb@w1)/L with b1 + ones column folded in
    w2_ref  : VMEM [H_pad, C_pad]  second Linear with b2 folded in
    out_ref : VMEM [B, C_pad]      logits (lane-dense; caller slices [:, :C])
    """
    B, L = ids_ref.shape
    V_pad = w1_ref.shape[0]

    ids = ids_ref[...]                                            # [B, L] int32

    # counts[b, v] = #{ l : ids[b, l] == v }.  Built with L static VPU compare+adds
    # (no scalar loop, no gathers).  The bias_row column is initialised to 1 so the
    # first matmul also applies b1 and produces the ones column for the second bias.
    iota_v = lax.broadcasted_iota(jnp.int32, (B, V_pad), 1)       # [B, V_pad]
    counts = (iota_v == bias_row).astype(jnp.int32)
    for l in range(L):                                            # L=8, fully unrolled
        counts = counts + (ids[:, l:l + 1] == iota_v).astype(jnp.int32)

    x = counts.astype(w1_ref.dtype)                               # single cast after loop

    # Linear1 (+bias, pool & embedding already folded in) -> ReLU
    h = jnp.dot(x, w1_ref[...], preferred_element_type=jnp.float32)   # [B, H_pad]
    h = jnp.maximum(h, 0.0)            # ReLU; the bias "ones" column stays at 1.0

    # Dropout(0.1): eval-mode identity.
    # Linear2 (+bias folded into row H of w2_aug)
    logits = jnp.dot(h.astype(w2_ref.dtype), w2_ref[...],
                     preferred_element_type=jnp.float32)          # [B, C_pad]
    out_ref[...] = logits.astype(out_ref.dtype)


def simple_classifier_forward(ids, w1_aug, w2_aug, meta):
    """ids: [B, L] int token ids (0 <= id < vocab).  Returns [B, num_classes] logits."""
    B, L = ids.shape
    V_pad, H_pad = w1_aug.shape
    C_pad = w2_aug.shape[1]
    C = meta["num_classes"]

    itemsize = jnp.dtype(w1_aug.dtype).itemsize
    flops = 2 * B * (V_pad * H_pad + H_pad * C_pad)
    bytes_accessed = (4 * ids.size
                      + itemsize * (w1_aug.size + w2_aug.size)
                      + 4 * B * C_pad)

    kernel = functools.partial(classifier_kernel, bias_row=meta["bias_row"])

    out = pl.pallas_call(
        kernel,
        out_shape=jax.ShapeDtypeStruct((B, C_pad), jnp.float32),
        in_specs=[
            pl.BlockSpec(memory_space=pltpu.MemorySpace.VMEM),   # token ids
            pl.BlockSpec(memory_space=pltpu.MemorySpace.VMEM),   # fused W1_aug
            pl.BlockSpec(memory_space=pltpu.MemorySpace.VMEM),   # W2_aug
        ],
        out_specs=pl.BlockSpec(memory_space=pltpu.MemorySpace.VMEM),
        cost_estimate=pl.CostEstimate(flops=flops, transcendentals=0,
                                      bytes_accessed=bytes_accessed),
    )(ids.astype(jnp.int32), w1_aug, w2_aug)

    return out[:, :C]


def reference_forward(ids, emb_table, w1, b1, w2, b2):
    """Plain-JAX reference of the PyTorch forward (eval mode), unfused parameters."""
    emb = jnp.take(emb_table, ids, axis=0)            # [B, L, D]
    pooled = emb.mean(axis=1)                         # [B, D]
    h = jnp.maximum(pooled @ w1 + b1, 0.0)            # Linear + ReLU
    return h @ w2 + b2                                # Linear


if __name__ == "__main__":
    # Small shapes consistent with the module: vocab=32, embedding_dim=32,
    # hidden=64 (fixed by the module), num_classes=4, batch=2, max_len=8.
    B, L = 2, 8
    V, D = 32, 32
    H, C = 64, 4

    key = jax.random.PRNGKey(0)
    k_ids, k_emb, k_w1, k_b1, k_w2, k_b2 = jax.random.split(key, 6)

    ids = jax.random.randint(k_ids, (B, L), 0, V, dtype=jnp.int32)
    emb_table = jax.random.normal(k_emb, (V, D), dtype=jnp.float32)
    # Linear weights stored as [in, out] (transposed vs. PyTorch's [out, in]).
    w1 = jax.random.normal(k_w1, (D, H), dtype=jnp.float32) * (1.0 / jnp.sqrt(D))
    b1 = jax.random.normal(k_b1, (H,), dtype=jnp.float32) * 0.01
    w2 = jax.random.normal(k_w2, (H, C), dtype=jnp.float32) * (1.0 / jnp.sqrt(H))
    b2 = jax.random.normal(k_b2, (C,), dtype=jnp.float32) * 0.01

    # One-time parameter prep (fusion + padding) -- NOT on the per-call path.
    # (Use param_dtype=jnp.bfloat16 on v6e/v7x for production; f32 here for exact check.)
    w1_aug, w2_aug, meta = prepare_classifier_params(
        emb_table, w1, b1, w2, b2, max_len=L, param_dtype=jnp.float32)
    w1_aug, w2_aug = jax.block_until_ready((w1_aug, w2_aug))

    logits = simple_classifier_forward(ids, w1_aug, w2_aug, meta)
    logits = jax.block_until_ready(logits)

    ref = reference_forward(ids, emb_table, w1, b1, w2, b2)
    assert logits.shape == (B, C)
    assert jnp.allclose(logits, ref, atol=1e-4, rtol=1e-4), "mismatch vs JAX reference"

    print("KERNEL_OK")
</pallas_src>

<mosaic_0001>
module attributes {stable_mosaic.version = 11 : i64} {
  func.func @classifier_kernel(%arg0: memref<2x8xi32, #tpu.memory_space<vmem>>, %arg1: memref<128x128xf32, #tpu.memory_space<vmem>>, %arg2: memref<128x128xf32, #tpu.memory_space<vmem>>, %arg3: memref<2x128xf32, #tpu.memory_space<vmem>>) attributes {dimension_semantics = [], scalar_prefetch = 0 : i64, scratch_operands = 0 : i64, tpu.core_type = #tpu.core_type<tc>} {
    %c0 = arith.constant 0 : index
    %c0_0 = arith.constant 0 : index
    %0 = vector.load %arg0[%c0, %c0_0] : memref<2x8xi32, #tpu.memory_space<vmem>>, vector<2x8xi32>
    %1 = tpu.iota {dimensions = array<i32: 1>} : vector<2x128xi32>
    %c32_i32 = arith.constant 32 : i32
    %2 = vector.broadcast %c32_i32 : i32 to vector<2x128xi32>
    %3 = arith.cmpi eq, %1, %2 : vector<2x128xi32>
    %4 = arith.extui %3 : vector<2x128xi1> to vector<2x128xi32>
    %5 = vector.extract_strided_slice %0 {offsets = [0, 0], sizes = [2, 1], strides = [1, 1]} : vector<2x8xi32> to vector<2x1xi32>
    %6 = vector.broadcast %5 : vector<2x1xi32> to vector<2x128xi32>
    %7 = arith.cmpi eq, %6, %1 : vector<2x128xi32>
    %8 = arith.extui %7 : vector<2x128xi1> to vector<2x128xi32>
    %9 = arith.addi %4, %8 : vector<2x128xi32>
    %10 = vector.extract_strided_slice %0 {offsets = [0, 1], sizes = [2, 1], strides = [1, 1]} : vector<2x8xi32> to vector<2x1xi32>
    %11 = vector.broadcast %10 : vector<2x1xi32> to vector<2x128xi32>
    %12 = arith.cmpi eq, %11, %1 : vector<2x128xi32>
    %13 = arith.extui %12 : vector<2x128xi1> to vector<2x128xi32>
    %14 = arith.addi %9, %13 : vector<2x128xi32>
    %15 = vector.extract_strided_slice %0 {offsets = [0, 2], sizes = [2, 1], strides = [1, 1]} : vector<2x8xi32> to vector<2x1xi32>
    %16 = vector.broadcast %15 : vector<2x1xi32> to vector<2x128xi32>
    %17 = arith.cmpi eq, %16, %1 : vector<2x128xi32>
    %18 = arith.extui %17 : vector<2x128xi1> to vector<2x128xi32>
    %19 = arith.addi %14, %18 : vector<2x128xi32>
    %20 = vector.extract_strided_slice %0 {offsets = [0, 3], sizes = [2, 1], strides = [1, 1]} : vector<2x8xi32> to vector<2x1xi32>
    %21 = vector.broadcast %20 : vector<2x1xi32> to vector<2x128xi32>
    %22 = arith.cmpi eq, %21, %1 : vector<2x128xi32>
    %23 = arith.extui %22 : vector<2x128xi1> to vector<2x128xi32>
    %24 = arith.addi %19, %23 : vector<2x128xi32>
    %25 = vector.extract_strided_slice %0 {offsets = [0, 4], sizes = [2, 1], strides = [1, 1]} : vector<2x8xi32> to vector<2x1xi32>
    %26 = vector.broadcast %25 : vector<2x1xi32> to vector<2x128xi32>
    %27 = arith.cmpi eq, %26, %1 : vector<2x128xi32>
    %28 = arith.extui %27 : vector<2x128xi1> to vector<2x128xi32>
    %29 = arith.addi %24, %28 : vector<2x128xi32>
    %30 = vector.extract_strided_slice %0 {offsets = [0, 5], sizes = [2, 1], strides = [1, 1]} : vector<2x8xi32> to vector<2x1xi32>
    %31 = vector.broadcast %30 : vector<2x1xi32> to vector<2x128xi32>
    %32 = arith.cmpi eq, %31, %1 : vector<2x128xi32>
    %33 = arith.extui %32 : vector<2x128xi1> to vector<2x128xi32>
    %34 = arith.addi %29, %33 : vector<2x128xi32>
    %35 = vector.extract_strided_slice %0 {offsets = [0, 6], sizes = [2, 1], strides = [1, 1]} : vector<2x8xi32> to vector<2x1xi32>
    %36 = vector.broadcast %35 : vector<2x1xi32> to vector<2x128xi32>
    %37 = arith.cmpi eq, %36, %1 : vector<2x128xi32>
    %38 = arith.extui %37 : vector<2x128xi1> to vector<2x128xi32>
    %39 = arith.addi %34, %38 : vector<2x128xi32>
    %40 = vector.extract_strided_slice %0 {offsets = [0, 7], sizes = [2, 1], strides = [1, 1]} : vector<2x8xi32> to vector<2x1xi32>
    %41 = vector.broadcast %40 : vector<2x1xi32> to vector<2x128xi32>
    %42 = arith.cmpi eq, %41, %1 : vector<2x128xi32>
    %43 = arith.extui %42 : vector<2x128xi1> to vector<2x128xi32>
    %44 = arith.addi %39, %43 : vector<2x128xi32>
    %45 = arith.sitofp %44 : vector<2x128xi32> to vector<2x128xf32>
    %c0_1 = arith.constant 0 : index
    %c0_2 = arith.constant 0 : index
    %46 = vector.load %arg1[%c0_1, %c0_2] : memref<128x128xf32, #tpu.memory_space<vmem>>, vector<128x128xf32>
    %cst = arith.constant dense<0.000000e+00> : vector<2x128xf32>
    %47 = tpu.matmul %45, %46, %cst {dimension_numbers = #tpu.dot_dimension_numbers<[1], [0], [0], [1], [0, 0, 1, 1], [], []>} : vector<2x128xf32>, vector<128x128xf32>, vector<2x128xf32> -> vector<2x128xf32>
    %cst_3 = arith.constant 0.000000e+00 : f32
    %48 = vector.broadcast %cst_3 : f32 to vector<2x128xf32>
    %49 = arith.maximumf %47, %48 : vector<2x128xf32>
    %c0_4 = arith.constant 0 : index
    %c0_5 = arith.constant 0 : index
    %50 = vector.load %arg2[%c0_4, %c0_5] : memref<128x128xf32, #tpu.memory_space<vmem>>, vector<128x128xf32>
    %cst_6 = arith.constant dense<0.000000e+00> : vector<2x128xf32>
    %51 = tpu.matmul %49, %50, %cst_6 {dimension_numbers = #tpu.dot_dimension_numbers<[1], [0], [0], [1], [0, 0, 1, 1], [], []>} : vector<2x128xf32>, vector<128x128xf32>, vector<2x128xf32> -> vector<2x128xf32>
    %c0_7 = arith.constant 0 : index
    %c0_8 = arith.constant 0 : index
    %52 = vector.load %arg3[%c0_7, %c0_8] : memref<2x128xf32, #tpu.memory_space<vmem>>, vector<2x128xf32>
    tpu.vector_store %arg3[%c0_7, %c0_8], %51 {strides = array<i32>} : memref<2x128xf32, #tpu.memory_space<vmem>>, vector<2x128xf32>,
    return
  }
}

</mosaic_0001>

<bundles_post_ra>
// kernel: tpu_custom_call.1
= control target key start
LH: loop header
LB: loop body
LE: loop exit
PB: predicated region body
PF: predicated region fallthrough
CT: control target
= control target key end

     0   :  { %8 = vsyncpa [#allocation3], 0  ;;  %s687_s0 = inlined_call_operand.hbm [shape: s32[2,8], index: 0, kind: input, shape index: {}]   ;;  %s688_s1 = inlined_call_operand.hbm [shape: f32[128,128], index: 1, kind: input, shape index: {}]   ;;  %s689_s2 = inlined_call_operand.hbm [shape: f32[128,128], index: 2, kind: input, shape index: {}]   ;;  %s690_s3 = inlined_call_operand.hbm [shape: f32[2,128], index: 3, kind: output, shape index: {}]  }
   0x1   :  { %9 = vsyncpa [#allocation6], 0 }
   0x2   :  { %10 = vsyncpa [#allocation4], 0  ;;  %s570_s12 = smov [#allocation5]   ;;  %s476_s16 = scalar_lea.hbm %s688_s1, 2048 }
   0x3   :  { %s26_s13 = sshll.u32 %s570_s12, 4  ;;  %p477_p0 = scmp.ne.s32.totalorder %s688_s1, %s476_s16  ;;  %s27_s13 = int_to_ptr.vmem [resolvable:$true] %s26_s13 }
   0x4   :  { %p480_p1 = scmp.lt.u32.totalorder %s476_s16, %s688_s1 }
   0x6   :  { %p482_p2 = pnand %p480_p1, %p477_p0 }
   0x8   :  { %485 = shalt.err (!%p482_p2)
}
   0x9   :  { %s486_s21 = scalar_lea.vmem %s27_s13, 2048  ;;  %p491_p4 = scmp.lt.s32.totalorder %s27_s13, %s27_s13 }
   0xa   :  { %p487_p3 = scmp.ne.s32.totalorder %s27_s13, %s486_s21  ;;  %p492_p5 = scmp.lt.s32.totalorder %s486_s21, %s486_s21 }
   0xc   :  { %p493_p6 = por %p492_p5, %p491_p4 }
   0xe   :  { %p494_p7 = pnand %p493_p6, %p487_p3 }
  0x10   :  { %497 = shalt.err (!%p494_p7)
}
  0x11   :  { %s571_s22 = smov 128   ;;  %s572_s23 = smov 8  }
  0x12   :  { %32 = dma.hbm_to_vmem [thread:$0]  %s688_s1, 2048, %s27_s13, [#allocation6], %s571_s22, %s571_s22, %s572_s23  }
  0x13   :  { %s573_s26 = smov [#allocation2]   ;;  %s574_s28 = smov [#allocation7]  }
  0x14   :  { %s17_s27 = sshll.u32 %s573_s26, 4  ;;  %s38_s29 = sshll.u32 %s574_s28, 4  ;;  %s18_s27 = int_to_ptr.vmem [resolvable:$true] %s17_s27  ;;  %s39_s29 = int_to_ptr.vmem [resolvable:$true] %s38_s29 }
  0x15   :  { %s498_s5 = scalar_lea.hbm %s687_s0, 32 }
  0x16   :  { %p499_p8 = scmp.ne.s32.totalorder %s687_s0, %s498_s5  ;;  %p502_p9 = scmp.lt.u32.totalorder %s498_s5, %s687_s0 }
  0x18   :  { %p504_p10 = pnand %p502_p9, %p499_p8 }
  0x1a   :  { %507 = shalt.err (!%p504_p10)
}
  0x1b   :  { %s508_s1 = scalar_lea.vmem %s18_s27, 32  ;;  %p513_p12 = scmp.lt.s32.totalorder %s18_s27, %s18_s27 }
  0x1c   :  { %p509_p11 = scmp.ne.s32.totalorder %s18_s27, %s508_s1  ;;  %p514_p13 = scmp.lt.s32.totalorder %s508_s1, %s508_s1 }
  0x1e   :  { %p515_p0 = por %p514_p13, %p513_p12 }
  0x20   :  { %p516_p1 = pnand %p515_p0, %p509_p11 }
  0x22   :  { %519 = shalt.err (!%p516_p1)
}
  0x23   :  { %20 = dma.hbm_to_vmem [thread:$0]  %s687_s0, 32, %s18_s27, [#allocation3]  }
  0x24   :  { %s520_s14 = scalar_lea.hbm %s689_s2, 2048 }
  0x25   :  { %p521_p2 = scmp.ne.s32.totalorder %s689_s2, %s520_s14  ;;  %p524_p3 = scmp.lt.u32.totalorder %s520_s14, %s689_s2 }
  0x27   :  { %p526_p4 = pnand %p524_p3, %p521_p2 }
  0x29   :  { %529 = shalt.err (!%p526_p4)
}
  0x2a   :  { %s530_s19 = scalar_lea.vmem %s39_s29, 2048  ;;  %p535_p6 = scmp.lt.s32.totalorder %s39_s29, %s39_s29 }
  0x2b   :  { %p531_p5 = scmp.ne.s32.totalorder %s39_s29, %s530_s19  ;;  %p536_p7 = scmp.lt.s32.totalorder %s530_s19, %s530_s19 }
  0x2d   :  { %p537_p8 = por %p536_p7, %p535_p6 }
  0x2f   :  { %p538_p9 = pnand %p537_p8, %p531_p5 }
  0x31   :  { %541 = shalt.err (!%p538_p9)
}
  0x32   :  { %44 = dma.hbm_to_vmem [thread:$0]  %s689_s2, 2048, %s39_s29, [#allocation6], %s571_s22, %s571_s22, %s572_s23  }
  0x33   :  { %564 = dma.done.wait [#allocation3], 32  }
  0x34   :  { %565 = vsyncadd [#allocation3], 4294967264 }
  0x35   :  { %566 = dma.done.wait [#allocation6], 4096  }
  0x36   :  { %567 = vsyncadd [#allocation6], 4294963200  ;;  %v575_v0 = vmov 2   ;;  %v576_v1 = vmov 0   ;;  %v577_v2 = vmov 0.0|0.0   ;;  %v108_v4 = vld [vmem:[#allocation5] sm:$0xff]  ;;  %v55_v56 = vlaneseq }
  0x37   :  { %469 = vset.pattern.permute.xlu1 %v575_v0  ;;  %467 = vset.pattern.permute.xlu0 %v576_v1  ;;  %v54_v3 = vld [vmem:[#allocation2] sm:$0x3]  ;;  %v109_v5 = vld [vmem:[#allocation5 + $0x8] sm:$0xff]  ;;  %v110_v7 = vld [vmem:[#allocation5 + $0x10] sm:$0xff]  ;;  %v578_v10 = vmov 3   ;;  %v579_v11 = vmov 1  }
  0x38   :  { %402 = vmatprep.subr.bf16.mxu0 %v577_v2  ;;  %426 = vmatprep.subr.bf16.mxu1 %v577_v2  ;;  %v403_v6 = vpack.c.bf16 %v109_v5, %v108_v4  ;;  %v111_v8 = vld [vmem:[#allocation5 + $0x18] sm:$0xff]  ;;  %v112_v12 = vld [vmem:[#allocation5 + $0x20] sm:$0xff]  ;;  %v113_v13 = vld [vmem:[#allocation5 + $0x28] sm:$0xff]  ;;  %v580_v17 = vmov 4   ;;  %v581_v18 = vmov 5   ;;  %v582_v22 = vmov 6  }
  0x39   :  { %72 = vperm.xlu1 %469, %v54_v3   ;;  %60 = vperm.xlu0 %467, %v54_v3   ;;  %v406_v9 = vpack.c.bf16 %v111_v8, %v110_v7  ;;  %v409_v14 = vpack.c.bf16 %v113_v13, %v112_v12  ;;  %v114_v15 = vld [vmem:[#allocation5 + $0x30] sm:$0xff]  ;;  %v115_v16 = vld [vmem:[#allocation5 + $0x38] sm:$0xff]  ;;  %v116_v20 = vld [vmem:[#allocation5 + $0x40] sm:$0xff]  ;;  %v583_v23 = vmov 7   ;;  %vm584_vm0 = vmmov 0   ;;  %s586_s2 = smov [#allocation8]  }
  0x3a   :  { %404 = vmatpush3.bf16.msra.mxu0 %v403_v6  ;;  %v412_v19 = vpack.c.bf16 %v115_v16, %v114_v15  ;;  %v117_v21 = vld [vmem:[#allocation5 + $0x48] sm:$0xff]  ;;  %v118_v25 = vld [vmem:[#allocation5 + $0x50] sm:$0xff]  ;;  %v119_v26 = vld [vmem:[#allocation5 + $0x58] sm:$0xff]  ;;  %v585_v33 = vmov 0.0   ;;  %v56_v57 = vand.u32 127, %v55_v56  ;;  %s288_s21 = sshll.u32 %s586_s2, 4  ;;  %s289_s21 = int_to_ptr.vmem [resolvable:$true] %s288_s21 }
  0x3b   :  { %405 = vmatprep.subr.bf16.mxu0 %v577_v2  ;;  %v415_v24 = vpack.c.bf16 %v117_v21, %v116_v20  ;;  %v418_v27 = vpack.c.bf16 %v119_v26, %v118_v25  ;;  %v120_v28 = vld [vmem:[#allocation5 + $0x60] sm:$0xff]  ;;  %v121_v29 = vld [vmem:[#allocation5 + $0x68] sm:$0xff]  ;;  %v122_v31 = vld [vmem:[#allocation5 + $0x70] sm:$0xff]  ;;  %364 = vmatprep.mubr.msk.f32.mxu0 %vm584_vm0, %v585_v33  ;;  %s542_s22 = scalar_lea.vmem %s289_s21, 32  ;;  %p547_p11 = scmp.lt.s32.totalorder %s289_s21, %s289_s21 }
  0x3c   :  { %v421_v30 = vpack.c.bf16 %v121_v29, %v120_v28  ;;  %v123_v32 = vld [vmem:[#allocation5 + $0x78] sm:$0xff]  ;;  %399 = vmatprep.mubr.msk.f32.mxu1 %vm584_vm0, %v585_v33  ;;  %v195_v34 = vld [vmem:[#allocation7] sm:$0xff]  ;;  %v196_v35 = vld [vmem:[#allocation7 + $0x8] sm:$0xff]  ;;  %vm57_vm1 = vcmp.eq.s32.totalorder %v56_v57, 32  ;;  %p543_p10 = scmp.ne.s32.totalorder %s289_s21, %s542_s22  ;;  %p548_p12 = scmp.lt.s32.totalorder %s542_s22, %s542_s22 }
  0x3d   :  { %470 = vset.pattern.permute.xlu1 %v578_v10  ;;  %468 = vset.pattern.permute.xlu0 %v579_v11  ;;  %v197_v36 = vld [vmem:[#allocation7 + $0x10] sm:$0xff]  ;;  %v424_v37 = vpack.c.bf16 %v123_v32, %v122_v31  ;;  %v427_v38 = vpack.c.bf16 %v196_v35, %v195_v34  ;;  %v198_v39 = vld [vmem:[#allocation7 + $0x18] sm:$0xff]  ;;  %v199_v41 = vld [vmem:[#allocation7 + $0x20] sm:$0xff]  ;;  %v58_v60 = vsel %vm57_vm1, 1, %v576_v1 }
  0x3e   :  { %78 = vperm.xlu1 %470, %v54_v3   ;;  %66 = vperm.xlu0 %468, %v54_v3   ;;  %v430_v40 = vpack.c.bf16 %v198_v39, %v197_v36  ;;  %v200_v42 = vld [vmem:[#allocation7 + $0x28] sm:$0xff]  ;;  %v201_v44 = vld [vmem:[#allocation7 + $0x30] sm:$0xff]  ;;  %v202_v45 = vld [vmem:[#allocation7 + $0x38] sm:$0xff]  ;;  %p549_p13 = por %p548_p12, %p547_p11 }
  0x3f   :  { %407 = vmatpush3.bf16.msra.mxu0 %v406_v9  ;;  %428 = vmatpush3.bf16.msra.mxu1 %v427_v38  ;;  %v433_v43 = vpack.c.bf16 %v200_v42, %v199_v41  ;;  %v436_v46 = vpack.c.bf16 %v202_v45, %v201_v44  ;;  %v203_v47 = vld [vmem:[#allocation7 + $0x40] sm:$0xff]  ;;  %v204_v48 = vld [vmem:[#allocation7 + $0x48] sm:$0xff]  ;;  %v205_v50 = vld [vmem:[#allocation7 + $0x50] sm:$0xff] }
  0x40   :  { %408 = vmatprep.subr.bf16.mxu0 %v577_v2  ;;  %429 = vmatprep.subr.bf16.mxu1 %v577_v2  ;;  %v439_v49 = vpack.c.bf16 %v204_v48, %v203_v47  ;;  %v206_v51 = vld [vmem:[#allocation7 + $0x58] sm:$0xff]  ;;  %v207_v53 = vld [vmem:[#allocation7 + $0x60] sm:$0xff]  ;;  %v208_v54 = vld [vmem:[#allocation7 + $0x68] sm:$0xff]  ;;  %p550_p0 = pnand %p549_p13, %p543_p10 }
  0x41   :  { %v442_v52 = vpack.c.bf16 %v206_v51, %v205_v50  ;;  %v445_v55 = vpack.c.bf16 %v208_v54, %v207_v53  ;;  %v209_v21 = vld [vmem:[#allocation7 + $0x70] sm:$0xff] }
  0x42   :  { %471 = vset.pattern.permute.xlu1 %v580_v17  ;;  %472 = vset.pattern.permute.xlu0 %v581_v18 }
  0x43   :  { %84 = vperm.xlu1 %471, %v54_v3   ;;  %90 = vperm.xlu0 %472, %v54_v3  }
  0x44   :  { %410 = vmatpush3.bf16.msra.mxu0 %v409_v14  ;;  %431 = vmatpush3.bf16.msra.mxu1 %v430_v40 }
  0x45   :  { %411 = vmatprep.subr.bf16.mxu0 %v577_v2  ;;  %432 = vmatprep.subr.bf16.mxu1 %v577_v2 }
  0x47   :  { %473 = vset.pattern.permute.xlu1 %v582_v22  ;;  %475 = vset.pattern.permute.xlu0 %v583_v23  ;;  %v210_v22 = vld [vmem:[#allocation7 + $0x78] sm:$0xff] }
  0x48   :  { %96 = vperm.xlu1 %473, %v54_v3   ;;  %413 = vmatpush3.bf16.msra.mxu0 %v412_v19 }
  0x49   :  { %414 = vmatprep.subr.bf16.mxu0 %v577_v2  ;;  %434 = vmatpush3.bf16.msra.mxu1 %v433_v43 }
  0x4a   :  { %435 = vmatprep.subr.bf16.mxu1 %v577_v2 }
  0x4c   :  { %474 = vset.pattern.permute.xlu1 %v583_v23  ;;  %416 = vmatpush3.bf16.msra.mxu0 %v415_v24  ;;  %v448_v23 = vpack.c.bf16 %v210_v22, %v209_v21 }
  0x4d   :  { %102 = vperm.xlu1 %474, %v54_v3   ;;  %417 = vmatprep.subr.bf16.mxu0 %v577_v2 }
  0x4e   :  { %437 = vmatpush3.bf16.msra.mxu1 %v436_v46 }
  0x4f   :  { %438 = vmatprep.subr.bf16.mxu1 %v577_v2 }
  0x50   :  { %419 = vmatpush3.bf16.msra.mxu0 %v418_v27 }
  0x51   :  { %420 = vmatprep.subr.bf16.mxu0 %v577_v2 }
  0x52   :  { %440 = vmatpush3.bf16.msra.mxu1 %v439_v49 }
  0x53   :  { %441 = vmatprep.subr.bf16.mxu1 %v577_v2 }
  0x54   :  { %422 = vmatpush3.bf16.msra.mxu0 %v421_v30 }
  0x55   :  { %423 = vmatprep.subr.bf16.mxu0 %v577_v2 }
  0x56   :  { %443 = vmatpush3.bf16.msra.mxu1 %v442_v52 }
  0x57   :  { %444 = vmatprep.subr.bf16.mxu1 %v577_v2 }
  0x58   :  { %425 = vmatpush3.bf16.msra.mxu0 %v424_v37 }
  0x5a   :  { %446 = vmatpush3.bf16.msra.mxu1 %v445_v55 }
  0x5b   :  { %447 = vmatprep.subr.bf16.mxu1 %v577_v2 }
  0x5e   :  { %449 = vmatpush3.bf16.msra.mxu1 %v448_v23 }
  0xb8   :  { %v73_v58 = vpop.permute.xlu1 %72  ;;  %v61_v59 = vpop.permute.xlu0 %60 }
  0xb9   :  { %vm62_vm2 = vcmp.eq.s32.totalorder %v61_v59, %v56_v57  ;;  %vm74_vm3 = vcmp.eq.s32.totalorder %v73_v58, %v56_v57 }
  0xba   :  { %v63_v61 = vsel %vm62_vm2, 1, %v576_v1  ;;  %v75_v2 = vsel %vm74_vm3, 1, %v576_v1 }
  0xbb   :  { %v64_v62 = vadd.s32 %v63_v61, %v58_v60 }
  0xbd   :  { %v79_v63 = vpop.permute.xlu1 %78  ;;  %v67_v0 = vpop.permute.xlu0 %66 }
  0xbe   :  { %vm68_vm4 = vcmp.eq.s32.totalorder %v67_v0, %v56_v57  ;;  %vm80_vm5 = vcmp.eq.s32.totalorder %v79_v63, %v56_v57 }
  0xbf   :  { %v69_v3 = vsel %vm68_vm4, 1, %v576_v1  ;;  %v81_v8 = vsel %vm80_vm5, 1, %v576_v1 }
  0xc0   :  { %v70_v4 = vadd.s32 %v69_v3, %v64_v62 }
  0xc2   :  { %v76_v5 = vadd.s32 %v75_v2, %v70_v4  ;;  %v85_v6 = vpop.permute.xlu1 %84  ;;  %v91_v7 = vpop.permute.xlu0 %90 }
  0xc3   :  { %vm86_vm6 = vcmp.eq.s32.totalorder %v85_v6, %v56_v57  ;;  %vm92_vm7 = vcmp.eq.s32.totalorder %v91_v7, %v56_v57 }
  0xc4   :  { %v82_v9 = vadd.s32 %v81_v8, %v76_v5  ;;  %v87_v10 = vsel %vm86_vm6, 1, %v576_v1  ;;  %v93_v12 = vsel %vm92_vm7, 1, %v576_v1 }
  0xc6   :  { %v88_v11 = vadd.s32 %v87_v10, %v82_v9 }
  0xc7   :  { %v97_v13 = vpop.permute.xlu1 %96 }
  0xc8   :  { %vm98_vm8 = vcmp.eq.s32.totalorder %v97_v13, %v56_v57  ;;  %v94_v14 = vadd.s32 %v93_v12, %v88_v11 }
  0xc9   :  { %v99_v15 = vsel %vm98_vm8, 1, %v576_v1 }
  0xca   :  { %v100_v17 = vadd.s32 %v99_v15, %v94_v14 }
  0xcc   :  { %v103_v16 = vpop.permute.xlu1 %102 }
  0xcd   :  { %vm104_vm9 = vcmp.eq.s32.totalorder %v103_v16, %v56_v57 }
  0xce   :  { %v105_v18 = vsel %vm104_vm9, 1, %v576_v1 }
  0xcf   :  { %v106_v19 = vadd.s32 %v105_v18, %v100_v17 }
  0xd1   :  { %v107_v20 = vcvt.s32.f32 %v106_v19 }
  0xd3   :  { %365 = vmatmul.mubr.f32.vlgmr.msra.gmra.mrb[0].mxu0 %v107_v20 }
 0x1a6   :  { %v190_v24 = vpop.f32.mrb[0].mxu0 }
 0x1a7   :  { %v194_v25 = vmax.f32 %v190_v24, 0.0  ;;  %v366_v26 = vpop.f32.mrb[1].mxu0 }
 0x1a9   :  { %400 = vmatmul.mubr.f32.vlgmr.msra.gmra.mrb[0].mxu1 %v194_v25 }
 0x27c   :  { %v277_v27 = vpop.f32.mrb[0].mxu1 }
 0x27d   :  { %281 = vst [vmem:[#allocation8] sm:$0x3] %v277_v27  ;;  %v401_v28 = vpop.f32.mrb[1].mxu1 }
 0x27e   :  { %553 = shalt.err (!%p550_p0)
}
 0x27f   :  { %s554_s25 = scalar_lea.hbm %s690_s3, 32 }
 0x280   :  { %p555_p1 = scmp.ne.s32.totalorder %s690_s3, %s554_s25  ;;  %p558_p2 = scmp.lt.u32.totalorder %s554_s25, %s690_s3 }
 0x282   :  { %p560_p3 = pnand %p558_p2, %p555_p1 }
 0x284   :  { %563 = shalt.err (!%p560_p3)
}
 0x285   :  { %291 = dma.vmem_to_hbm [thread:$0]  %s289_s21, 32, %s690_s3, [#allocation4]  }
 0x286   :  { %568 = dma.done.wait [#allocation4], 32  }
 0x287   :  { %569 = vsyncadd [#allocation4], 4294967264 }
 0x288   :  { %295 = vsyncpa [#allocation3], 1 }
 0x289   :  { %296 = vsyncpa [#allocation6], 1 }
 0x28a   :  { %297 = vsyncpa [#allocation4], 1 }

</bundles_post_ra>
